<compile_context>
chip_gen: v6e
topology: v6e:2x2x1
jax: 0.10.0
libtpu: 0.0.40
codegen_flags: <defaults>
</compile_context>

<pallas_src>
import jax
import jax.numpy as jnp
from jax.experimental import pallas as pl
from jax.experimental.pallas import tpu as pltpu
import numpy as np

# ---------------- small, module-consistent config ----------------
B, T = 2, 4          # batch, num_frames   (real model: num_frames=32)
CIN = 3              # input image channels
H = W = 8            # spatial size
HW = H * W
CF = 64              # backbone feature channels (real model: 2048)
NCLS = 8             # num_classes          (real model: 73)
RED = 16             # SAttention reduction
CHID = CF // RED     # SAttention hidden width
LANE = 128           # lane-dense output / fused-head width


# ---------------- Pallas kernel (one step = one video, all frames fused) ----------------
def dcehaa_kernel(x_ref, w1_ref, wh_ref, bh_ref, wa2_ref, slab_ref, pred_ref):
    """x_ref   : (1, T*HW, CIN)  channels-last frames of one video
       w1_ref  : (CIN, CF)       proxy-backbone 1x1-conv stem
       wh_ref  : (CF, LANE)      fused head weights: [wcls | wa1 | zero pad]
       bh_ref  : (1, LANE)       classifier bias, zero padded
       wa2_ref : (1, LANE)       2nd attention weight scattered onto cols [NCLS, NCLS+CHID)
       slab_ref: (1, T, LANE)    out: frame logits in cols [0,NCLS), raw attn score in col NCLS
       pred_ref: (1, 1, LANE)    out: attention-weighted prediction in cols [0,NCLS)
    """
    x = x_ref[0]                                                       # (T*HW, CIN)
    # proxy backbone: relu(1x1 conv) as ONE matmul over all frames of the video
    feat = jnp.maximum(
        jnp.dot(x, w1_ref[...], preferred_element_type=jnp.float32), 0.0)   # (T*HW, CF)
    # AdaptiveAvgPool2d(1): mean over spatial positions, per frame
    pooled = jnp.mean(feat.reshape(T, HW, CF), axis=1)                 # (T, CF)

    # fused heads: classifier + first attention linear in a single lane-dense matmul
    head = jnp.dot(pooled, wh_ref[...], preferred_element_type=jnp.float32)  # (T, LANE)

    col = jax.lax.broadcasted_iota(jnp.int32, (1, LANE), 1)
    mask_cls = (col < NCLS).astype(jnp.float32)
    fp = head * mask_cls + bh_ref[...]                                 # (T, LANE) frame logits

    # SAttention.fc tail: ReLU -> Dropout(eval identity) -> Linear(CHID, 1)
    # 2nd linear done on the VPU as a masked lane reduction (wa2 scattered on lanes,
    # zero everywhere else, so the relu'd classifier columns contribute nothing).
    y = jnp.sum(jnp.maximum(head, 0.0) * wa2_ref[...],
                axis=1, keepdims=True)                                 # (T, 1)

    # softmax over frames + attention-weighted sum of frame logits (fused, no 2nd kernel)
    m = jnp.max(y, axis=0, keepdims=True)
    e = jnp.exp(y - m)
    att = e / jnp.sum(e, axis=0, keepdims=True)                        # (T, 1)
    pred = jnp.sum(fp * att, axis=0, keepdims=True)                    # (1, LANE)

    # single lane-dense slab store: logits + raw attention score packed in col NCLS
    slab_ref[0] = fp + y * (col == NCLS).astype(jnp.float32)
    pred_ref[0] = pred


# ---------------- wrapper ----------------
def dcehaa_forward(x, params):
    """x: (B, T, C, H, W) float32. Returns (pred, atte, frame_preds)."""
    w1, wcls, bcls, wa1, wa2 = params
    Bb, Tt, C, Hh, Ww = x.shape
    thw = Tt * Hh * Ww

    # NCHW frames -> channels-last (B, T*H*W, C); one contiguous slab per video
    xf = jnp.transpose(x.reshape(Bb, Tt, C, Hh * Ww), (0, 1, 3, 2)).reshape(Bb, thw, C)
    xf = xf.astype(jnp.float32)
    # TODO(synk): at real sizes (CF=2048) cast x / weights to bf16 here (keep f32
    # accumulation via preferred_element_type); kept f32 at toy size for exact
    # parity with the f32 reference.

    # lane-dense fused head weights (classifier || first attention linear, zero padded)
    w_head = (jnp.zeros((CF, LANE), jnp.float32)
              .at[:, :NCLS].set(wcls)
              .at[:, NCLS:NCLS + CHID].set(wa1))
    b_head = jnp.zeros((1, LANE), jnp.float32).at[:, :NCLS].set(bcls)
    wa2_row = jnp.zeros((1, LANE), jnp.float32).at[:, NCLS:NCLS + CHID].set(wa2.T)

    slab, pred3 = pl.pallas_call(
        dcehaa_kernel,
        out_shape=(jax.ShapeDtypeStruct((Bb, Tt, LANE), jnp.float32),
                   jax.ShapeDtypeStruct((Bb, 1, LANE), jnp.float32)),
        grid=(Bb,),
        in_specs=[pl.BlockSpec((1, thw, C), lambda b: (b, 0, 0)),
                  pl.BlockSpec((C, CF), lambda b: (0, 0)),
                  pl.BlockSpec((CF, LANE), lambda b: (0, 0)),
                  pl.BlockSpec((1, LANE), lambda b: (0, 0)),
                  pl.BlockSpec((1, LANE), lambda b: (0, 0))],
        out_specs=(pl.BlockSpec((1, Tt, LANE), lambda b: (b, 0, 0)),
                   pl.BlockSpec((1, 1, LANE), lambda b: (b, 0, 0))),
        compiler_params=pltpu.CompilerParams(dimension_semantics=("parallel",)),
    )(xf, w1, w_head, b_head, wa2_row)

    frame_preds = slab[:, :, :NCLS].reshape(Bb * Tt, NCLS)   # (B*T, num_classes)
    atte = slab[:, :, NCLS]                                  # (B, T) raw scores (y.view(-1, T))
    pred = pred3[:, 0, :NCLS]                                # (B, num_classes)
    return pred, atte, frame_preds


# ---------------- pure-JAX reference (correctness check) ----------------
def reference_forward(x, params):
    w1, wcls, bcls, wa1, wa2 = params
    Bb, Tt, C, Hh, Ww = x.shape
    N = Bb * Tt
    xf = jnp.transpose(x.reshape(N, C, Hh * Ww), (0, 2, 1))
    feat = jnp.maximum(xf @ w1, 0.0)                     # (N, HW, CF)
    pooled = jnp.mean(feat, axis=1)                      # (N, CF)
    frame_preds = pooled @ wcls + bcls                   # (N, NCLS)
    y = jnp.maximum(pooled @ wa1, 0.0) @ wa2             # (N, 1)
    atte = y.reshape(Bb, Tt)
    att = jax.nn.softmax(atte, axis=1)
    pred = jnp.sum(frame_preds.reshape(Bb, Tt, NCLS) * att[..., None], axis=1)
    return pred, atte, frame_preds


# ---------------- main ----------------
if __name__ == "__main__":
    key = jax.random.PRNGKey(0)
    k_x, k1, k2, k3, k4, k5 = jax.random.split(key, 6)

    x = jax.random.normal(k_x, (B, T, CIN, H, W), dtype=jnp.float32)

    # deterministic parameter init (proxy backbone + SAttention)
    w1 = jax.random.normal(k1, (CIN, CF), dtype=jnp.float32) * 0.05     # 1x1 conv stem
    wcls = jax.random.normal(k2, (CF, NCLS), dtype=jnp.float32) * 0.05  # classifier fc
    bcls = jax.random.normal(k3, (1, NCLS), dtype=jnp.float32) * 0.05
    wa1 = jax.random.normal(k4, (CF, CHID), dtype=jnp.float32) * 0.05   # SAttention fc[0]
    wa2 = jax.random.normal(k5, (CHID, 1), dtype=jnp.float32) * 0.05    # SAttention fc[3]
    params = (w1, wcls, bcls, wa1, wa2)

    pred, atte, frame_preds = jax.block_until_ready(dcehaa_forward(x, params))
    pred_r, atte_r, fp_r = reference_forward(x, params)

    assert pred.shape == (B, NCLS)
    assert atte.shape == (B, T)
    assert frame_preds.shape == (B * T, NCLS)
    np.testing.assert_allclose(np.asarray(pred), np.asarray(pred_r), rtol=1e-5, atol=1e-5)
    np.testing.assert_allclose(np.asarray(atte), np.asarray(atte_r), rtol=1e-5, atol=1e-5)
    np.testing.assert_allclose(np.asarray(frame_preds), np.asarray(fp_r), rtol=1e-5, atol=1e-5)

    print("KERNEL_OK")
</pallas_src>

<mosaic_0001>
module attributes {stable_mosaic.version = 11 : i64} {
  func.func @dcehaa_kernel(%arg0: i32, %arg1: memref<1x256x3xf32, #tpu.memory_space<vmem>>, %arg2: memref<3x64xf32, #tpu.memory_space<vmem>>, %arg3: memref<64x128xf32, #tpu.memory_space<vmem>>, %arg4: memref<1x128xf32, #tpu.memory_space<vmem>>, %arg5: memref<1x128xf32, #tpu.memory_space<vmem>>, %arg6: memref<1x4x128xf32, #tpu.memory_space<vmem>>, %arg7: memref<1x1x128xf32, #tpu.memory_space<vmem>>) attributes {dimension_semantics = [#tpu.dimension_semantics<parallel>], iteration_bounds = array<i64: 2>, scalar_prefetch = 0 : i64, scratch_operands = 0 : i64, tpu.core_type = #tpu.core_type<tc>, window_params = [{transform_indices = @transform_0, window_bounds = array<i64: 1, 256, 3>}, {pipeline_mode = #tpu.pipeline_mode<synchronous>, transform_indices = @transform_1, window_bounds = array<i64: 3, 64>}, {pipeline_mode = #tpu.pipeline_mode<synchronous>, transform_indices = @transform_2, window_bounds = array<i64: 64, 128>}, {pipeline_mode = #tpu.pipeline_mode<synchronous>, transform_indices = @transform_3, window_bounds = array<i64: 1, 128>}, {pipeline_mode = #tpu.pipeline_mode<synchronous>, transform_indices = @transform_4, window_bounds = array<i64: 1, 128>}, {transform_indices = @transform_5, window_bounds = array<i64: 1, 4, 128>}, {transform_indices = @transform_6, window_bounds = array<i64: 1, 1, 128>}]} {
    %c0 = arith.constant 0 : index
    %c0_0 = arith.constant 0 : index
    %c0_1 = arith.constant 0 : index
    %0 = vector.load %arg1[%c0, %c0_0, %c0_1] : memref<1x256x3xf32, #tpu.memory_space<vmem>>, vector<1x256x3xf32>
    %1 = vector.shape_cast %0 : vector<1x256x3xf32> to vector<256x3xf32>
    %c0_2 = arith.constant 0 : index
    %c0_3 = arith.constant 0 : index
    %2 = vector.load %arg2[%c0_2, %c0_3] : memref<3x64xf32, #tpu.memory_space<vmem>>, vector<3x64xf32>
    %cst = arith.constant dense<0.000000e+00> : vector<256x64xf32>
    %3 = tpu.matmul %1, %2, %cst {dimension_numbers = #tpu.dot_dimension_numbers<[1], [0], [0], [1], [0, 0, 1, 1], [], []>} : vector<256x3xf32>, vector<3x64xf32>, vector<256x64xf32> -> vector<256x64xf32>
    %cst_4 = arith.constant 0.000000e+00 : f32
    %4 = vector.broadcast %cst_4 : f32 to vector<256x64xf32>
    %5 = arith.maximumf %3, %4 : vector<256x64xf32>
    %6 = vector.shape_cast %5 : vector<256x64xf32> to vector<4x64x64xf32>
    %cst_5 = arith.constant dense<0.000000e+00> : vector<4x64xf32>
    %7 = vector.multi_reduction <add>, %6, %cst_5 [1] : vector<4x64x64xf32> to vector<4x64xf32>
    %cst_6 = arith.constant 6.400000e+01 : f32
    %8 = vector.broadcast %cst_6 : f32 to vector<4x64xf32>
    %9 = arith.divf %7, %8 : vector<4x64xf32>
    %c0_7 = arith.constant 0 : index
    %c0_8 = arith.constant 0 : index
    %10 = vector.load %arg3[%c0_7, %c0_8] : memref<64x128xf32, #tpu.memory_space<vmem>>, vector<64x128xf32>
    %cst_9 = arith.constant dense<0.000000e+00> : vector<4x128xf32>
    %11 = tpu.matmul %9, %10, %cst_9 {dimension_numbers = #tpu.dot_dimension_numbers<[1], [0], [0], [1], [0, 0, 1, 1], [], []>} : vector<4x64xf32>, vector<64x128xf32>, vector<4x128xf32> -> vector<4x128xf32>
    %12 = tpu.iota {dimensions = array<i32: 1>} : vector<1x128xi32>
    %c8_i32 = arith.constant 8 : i32
    %13 = vector.broadcast %c8_i32 : i32 to vector<1x128xi32>
    %14 = arith.cmpi slt, %12, %13 : vector<1x128xi32>
    %15 = arith.extui %14 : vector<1x128xi1> to vector<1x128xi32>
    %16 = arith.sitofp %15 : vector<1x128xi32> to vector<1x128xf32>
    %17 = vector.broadcast %16 : vector<1x128xf32> to vector<4x128xf32>
    %18 = arith.mulf %11, %17 : vector<4x128xf32>
    %c0_10 = arith.constant 0 : index
    %c0_11 = arith.constant 0 : index
    %19 = vector.load %arg4[%c0_10, %c0_11] : memref<1x128xf32, #tpu.memory_space<vmem>>, vector<1x128xf32>
    %20 = vector.broadcast %19 : vector<1x128xf32> to vector<4x128xf32>
    %21 = arith.addf %18, %20 : vector<4x128xf32>
    %cst_12 = arith.constant 0.000000e+00 : f32
    %22 = vector.broadcast %cst_12 : f32 to vector<4x128xf32>
    %23 = arith.maximumf %11, %22 : vector<4x128xf32>
    %c0_13 = arith.constant 0 : index
    %c0_14 = arith.constant 0 : index
    %24 = vector.load %arg5[%c0_13, %c0_14] : memref<1x128xf32, #tpu.memory_space<vmem>>, vector<1x128xf32>
    %25 = vector.broadcast %24 : vector<1x128xf32> to vector<4x128xf32>
    %26 = arith.mulf %23, %25 : vector<4x128xf32>
    %cst_15 = arith.constant dense<0.000000e+00> : vector<4xf32>
    %27 = vector.multi_reduction <add>, %26, %cst_15 [1] : vector<4x128xf32> to vector<4xf32>
    %28 = vector.shape_cast %27 : vector<4xf32> to vector<4x1xf32>
    %cst_16 = arith.constant dense<0xFF800000> : vector<1xf32>
    %29 = vector.multi_reduction <maximumf>, %28, %cst_16 [0] : vector<4x1xf32> to vector<1xf32>
    %30 = vector.shape_cast %29 : vector<1xf32> to vector<1x1xf32>
    %31 = vector.broadcast %30 : vector<1x1xf32> to vector<4x1xf32>
    %32 = arith.subf %28, %31 : vector<4x1xf32>
    %33 = math.exp %32 : vector<4x1xf32>
    %cst_17 = arith.constant dense<0.000000e+00> : vector<1xf32>
    %34 = vector.multi_reduction <add>, %33, %cst_17 [0] : vector<4x1xf32> to vector<1xf32>
    %35 = vector.shape_cast %34 : vector<1xf32> to vector<1x1xf32>
    %36 = vector.broadcast %35 : vector<1x1xf32> to vector<4x1xf32>
    %37 = arith.divf %33, %36 : vector<4x1xf32>
    %38 = vector.broadcast %37 : vector<4x1xf32> to vector<4x128xf32>
    %39 = arith.mulf %21, %38 : vector<4x128xf32>
    %cst_18 = arith.constant dense<0.000000e+00> : vector<128xf32>
    %40 = vector.multi_reduction <add>, %39, %cst_18 [0] : vector<4x128xf32> to vector<128xf32>
    %41 = vector.shape_cast %40 : vector<128xf32> to vector<1x128xf32>
    %c8_i32_19 = arith.constant 8 : i32
    %42 = vector.broadcast %c8_i32_19 : i32 to vector<1x128xi32>
    %43 = arith.cmpi eq, %12, %42 : vector<1x128xi32>
    %44 = arith.extui %43 : vector<1x128xi1> to vector<1x128xi32>
    %45 = arith.sitofp %44 : vector<1x128xi32> to vector<1x128xf32>
    %46 = vector.broadcast %28 : vector<4x1xf32> to vector<4x128xf32>
    %47 = vector.broadcast %45 : vector<1x128xf32> to vector<4x128xf32>
    %48 = arith.mulf %46, %47 : vector<4x128xf32>
    %49 = arith.addf %21, %48 : vector<4x128xf32>
    %c0_20 = arith.constant 0 : index
    %c0_21 = arith.constant 0 : index
    %c0_22 = arith.constant 0 : index
    %50 = vector.load %arg6[%c0_20, %c0_21, %c0_22] : memref<1x4x128xf32, #tpu.memory_space<vmem>>, vector<1x4x128xf32>
    %51 = vector.shape_cast %50 : vector<1x4x128xf32> to vector<4x128xf32>
    %52 = vector.shape_cast %49 : vector<4x128xf32> to vector<1x4x128xf32>
    tpu.vector_store %arg6[%c0_20, %c0_21, %c0_22], %52 {strides = array<i32>} : memref<1x4x128xf32, #tpu.memory_space<vmem>>, vector<1x4x128xf32>,
    %c0_23 = arith.constant 0 : index
    %c0_24 = arith.constant 0 : index
    %c0_25 = arith.constant 0 : index
    %53 = vector.load %arg7[%c0_23, %c0_24, %c0_25] : memref<1x1x128xf32, #tpu.memory_space<vmem>>, vector<1x1x128xf32>
    %54 = vector.shape_cast %53 : vector<1x1x128xf32> to vector<1x128xf32>
    %55 = vector.shape_cast %41 : vector<1x128xf32> to vector<1x1x128xf32>
    tpu.vector_store %arg7[%c0_23, %c0_24, %c0_25], %55 {strides = array<i32>} : memref<1x1x128xf32, #tpu.memory_space<vmem>>, vector<1x1x128xf32>,
    return
  }
  func.func @transform_0(%arg0: i32) -> (i32, i32, i32) {
    %c0_i32 = arith.constant 0 : i32
    %c0_i32_0 = arith.constant 0 : i32
    %c0_i32_1 = arith.constant 0 : i32
    return %arg0, %c0_i32, %c0_i32_0 : i32, i32, i32
  }
  func.func @transform_1(%arg0: i32) -> (i32, i32) {
    %c0_i32 = arith.constant 0 : i32
    %c0_i32_0 = arith.constant 0 : i32
    %c0_i32_1 = arith.constant 0 : i32
    return %c0_i32, %c0_i32_0 : i32, i32
  }
  func.func @transform_2(%arg0: i32) -> (i32, i32) {
    %c0_i32 = arith.constant 0 : i32
    %c0_i32_0 = arith.constant 0 : i32
    %c0_i32_1 = arith.constant 0 : i32
    return %c0_i32, %c0_i32_0 : i32, i32
  }
  func.func @transform_3(%arg0: i32) -> (i32, i32) {
    %c0_i32 = arith.constant 0 : i32
    %c0_i32_0 = arith.constant 0 : i32
    %c0_i32_1 = arith.constant 0 : i32
    return %c0_i32, %c0_i32_0 : i32, i32
  }
  func.func @transform_4(%arg0: i32) -> (i32, i32) {
    %c0_i32 = arith.constant 0 : i32
    %c0_i32_0 = arith.constant 0 : i32
    %c0_i32_1 = arith.constant 0 : i32
    return %c0_i32, %c0_i32_0 : i32, i32
  }
  func.func @transform_5(%arg0: i32) -> (i32, i32, i32) {
    %c0_i32 = arith.constant 0 : i32
    %c0_i32_0 = arith.constant 0 : i32
    %c0_i32_1 = arith.constant 0 : i32
    return %arg0, %c0_i32, %c0_i32_0 : i32, i32, i32
  }
  func.func @transform_6(%arg0: i32) -> (i32, i32, i32) {
    %c0_i32 = arith.constant 0 : i32
    %c0_i32_0 = arith.constant 0 : i32
    %c0_i32_1 = arith.constant 0 : i32
    return %arg0, %c0_i32, %c0_i32_0 : i32, i32, i32
  }
}

</mosaic_0001>

<bundles_post_ra>
// kernel: tpu_custom_call.1
= control target key start
LH: loop header
LB: loop body
LE: loop exit
PB: predicated region body
PF: predicated region fallthrough
CT: control target
= control target key end

     0   :  { %12 = vsyncpa [#allocation3], 0  ;;  %s1644_s0 = inlined_call_operand.vmem [shape: f32[2,256,3], index: 0, kind: input, shape index: {}]   ;;  %s1645_s1 = inlined_call_operand.vmem [shape: f32[3,64], index: 1, kind: input, shape index: {}]   ;;  %s1646_s2 = inlined_call_operand.vmem [shape: f32[64,128], index: 2, kind: input, shape index: {}]   ;;  %s1647_s3 = inlined_call_operand.vmem [shape: f32[1,128], index: 3, kind: input, shape index: {}]   ;;  %s1648_s4 = inlined_call_operand.vmem [shape: f32[1,128], index: 4, kind: input, shape index: {}]   ;;  %s1649_s5 = inlined_call_operand.hbm [shape: f32[2,4,128], index: 5, kind: output, shape index: {0}]   ;;  %s1650_s6 = inlined_call_operand.hbm [shape: f32[2,1,128], index: 6, kind: output, shape index: {1}]  }
   0x1   :  { %14 = vsyncpa [#allocation3 + $0x1], 0 }
   0x2   :  { %15 = vsyncpa [#allocation5], 0 }
   0x3   :  { %17 = vsyncpa [#allocation5 + $0x1], 0  ;;  %s1355_s21 = smov 0   ;;  %s1357_s22 = smov 0  }
   0x4   :  { %s1359_s23 = smov 0   ;;  %s1361_s24 = smov 0  }
   0x5 LB: > { %s1376_s25 = sadd.s32 4294967295, %s1314_s24   ;;  %s1010_s26 = sadd.s32 4294967294, %s1314_s24   ;;  %s1314_s24 = sphi %s1361_s24, %s1656_s24   ;;  %s1310_s23 = sphi %s1359_s23, %s1655_s23   ;;  %s1306_s22 = sphi %s1357_s22, %s1654_s22   ;;  %s1302_s21 = sphi %s1355_s21, %s1653_s21  }
   0x6   : > { %s1380_s27 = sadd.s32 1, %s1314_s24   ;;  %s140_s28 = sadd.s32 1, %s1310_s23 }
   0x7   : > { %s137_s29 = ssub.s32 %s1314_s24, %s1380_s27  ;;  %p150_p0 = scmp.ne.s32.totalorder %s1310_s23, %s1306_s22 }
   0x8   : > { %p138_p1 = scmp.eq.s32.totalorder %s137_s29, 0  ;;  %p151_p2 = scmp.eq.s32.totalorder %s1376_s25, 1 }
   0x9   : > { %p156_p3 = scmp.ne.s32.totalorder %s1306_s22, %s1302_s21  ;;  %p157_p4 = scmp.eq.s32.totalorder %s1010_s26, 1 }
   0xa   : > { %s1391_s30 = scalar_select %p138_p1, %s1310_s23, %s140_s28  }
   0xb   : > { %p1393_p5 = por %p151_p2, %p150_p0  ;;  %p1397_p6 = por %p157_p4, %p156_p3 }
   0xc   : > { %p1013_p7 = scmp.ge.s32.totalorder %s1314_s24, 1  ;;  %p221_p8 = scmp.lt.s32.totalorder %s1314_s24, 3 }
   0xe   : > { %p222_p9 = pnand %p1013_p7, %p221_p8 }
   0xf   : > { %p255_p10 = scmp.lt.s32.totalorder (!%p222_p9), %s1376_s25, 1  ;;  %s1569_s19 = sand.u32 (!%p222_p9), 1, %s1306_s22  }
  0x10   : > { %225 = sbr.rel (%p222_p9) target bundleno = 721 (0x2d1), region = 40  ;;  %s1014_s20 = sshll.u32 (!%p222_p9), %s1569_s19, 2 }
  0x11   : > { %s1056_s29 = sshll.u32 (!%p222_p9), %s1376_s25, 6  ;;  %s248_s9 = scalar_lea.vmem (!%p222_p9), [#allocation2], %s1014_s20 }
  0x12   : > { %s910_s10 = sshll.u32 (!%p222_p9), %s248_s9, 4  ;;  %s1582_s13 = scalar_lea.hbm (!%p222_p9), %s1649_s5, %s1056_s29  ;;  %s1584_s10 = int_to_ptr.vmem [resolvable:$true] %s910_s10 }
  0x13   : > { %s893_s14 = scalar_lea.sflag (!%p222_p9), [#allocation3], %s1569_s19  ;;  %s1318_s16 = smov (!%p222_p9), [#allocation2]  }
  0x14   : > { %s1228_s17 = sshll.u32 (!%p222_p9), %s1318_s16, 4  ;;  %s1229_s17 = int_to_ptr.vmem [resolvable:$false] %s1228_s17 }
  0x15   : > { %v292_v0 = vld [vmem:[%s1645_s1] sm:$0x7]  ;;  %vm390_vm0 = vcmask 1042432   ;;  %s256_s11 = scalar_select %p255_p10, %s1376_s25, 1  ;;  %vm293_vm1 = vcmask 23552   ;;  %v1316_v33 = vmov 0.0  }
  0x16   : > { %1103 = vmatprep.subr.msk.mxu0 %vm390_vm0, %v292_v0  ;;  %1172 = vmatprep.subr.msk.mxu1 %vm390_vm0, %v292_v0  ;;  %v748_v34 = vld [vmem:[%s1646_s2 + $0x38] sm:$0xff]  ;;  %v747_v35 = vld [vmem:[%s1646_s2 + $0x30] sm:$0xff]  ;;  %v746_v36 = vld [vmem:[%s1646_s2 + $0x28] sm:$0xff]  ;;  %vm1317_vm2 = vmmov 0   ;;  %vm651_vm3 = vcmask 523264   ;;  %vm753_vm4 = vcmask 1041409   ;;  %p1231_p0 = scmp.lt.s32.totalorder %s1584_s10, %s1229_s17 }
  0x17   : > { %1104 = vmatpush3.msk.msra.mxu0 %vm390_vm0, %v292_v0  ;;  %1173 = vmatpush3.msk.msra.mxu1 %vm390_vm0, %v292_v0  ;;  %s1060_s12 = sshll.u32 %s256_s11, 8  ;;  %v745_v37 = vld [vmem:[%s1646_s2 + $0x20] sm:$0xff]  ;;  %v744_v38 = vld [vmem:[%s1646_s2 + $0x18] sm:$0xff]  ;;  %v743_v39 = vld [vmem:[%s1646_s2 + $0x10] sm:$0xff]  ;;  %vm755_vm5 = vcmask 1042434   ;;  %vm757_vm6 = vcmask 1043459  }
  0x18   : > { %s1411_s15 = scalar_lea.vmem %s1644_s0, %s1060_s12  ;;  %1153 = vmatprep.subr.mxu1 %v1316_v33  ;;  %v742_v40 = vld [vmem:[%s1646_s2 + $0x8] sm:$0xff]  ;;  %v741_v41 = vld [vmem:[%s1646_s2] sm:$0xff]  ;;  %vm854_vm7 = vcmask 1043456   ;;  %s1230_s18 = scalar_lea.vmem %s1229_s17, 128 }
  0x19   : > { %v260_v1 = vld [vmem:[%s1411_s15] sm:$0xff]  ;;  %v261_v2 = vld [vmem:[%s1411_s15 + $0x8] sm:$0xff]  ;;  %v262_v3 = vld [vmem:[%s1411_s15 + $0x10] sm:$0xff] }
  0x1a   : > { %1105 = vmatprep.mubr.msk.f32.mxu0 %vm293_vm1, %v260_v1  ;;  %v278_v4 = vld [vmem:[%s1411_s15 + $0x90] sm:$0xff]  ;;  %v279_v5 = vld [vmem:[%s1411_s15 + $0x98] sm:$0xff]  ;;  %v280_v7 = vld [vmem:[%s1411_s15 + $0xa0] sm:$0xff] }
  0x1b   : > { %1106 = vmatmul.mubr.msk.f32.vlgmr.msra.gmra.mxu0 %vm293_vm1, %v261_v2  ;;  %v263_v6 = vld [vmem:[%s1411_s15 + $0x18] sm:$0xff]  ;;  %1132 = vmatprep.mubr.msk.f32.mxu1 %vm293_vm1, %v278_v4  ;;  %v264_v8 = vld [vmem:[%s1411_s15 + $0x20] sm:$0xff]  ;;  %v281_v9 = vld [vmem:[%s1411_s15 + $0xa8] sm:$0xff] }
  0x1c   : > { %1108 = vmatprep.mubr.msk.f32.mxu0 %vm293_vm1, %v262_v3  ;;  %1133 = vmatmul.mubr.msk.f32.vlgmr.msra.gmra.mxu1 %vm293_vm1, %v279_v5  ;;  %v282_v10 = vld [vmem:[%s1411_s15 + $0xb0] sm:$0xff]  ;;  %v265_v11 = vld [vmem:[%s1411_s15 + $0x28] sm:$0xff]  ;;  %v283_v13 = vld [vmem:[%s1411_s15 + $0xb8] sm:$0xff] }
  0x1d   : > { %1135 = vmatprep.mubr.msk.f32.mxu1 %vm293_vm1, %v280_v7  ;;  %v266_v12 = vld [vmem:[%s1411_s15 + $0x30] sm:$0xff]  ;;  %v284_v14 = vld [vmem:[%s1411_s15 + $0xc0] sm:$0xff]  ;;  %v267_v15 = vld [vmem:[%s1411_s15 + $0x38] sm:$0xff]  ;;  %1154 = vmatpush3.msra.mxu1 %v748_v34 }
  0x1e   : > { %v268_v16 = vld [vmem:[%s1411_s15 + $0x40] sm:$0xff]  ;;  %v285_v17 = vld [vmem:[%s1411_s15 + $0xc8] sm:$0xff]  ;;  %v286_v18 = vld [vmem:[%s1411_s15 + $0xd0] sm:$0xff]  ;;  %1155 = vmatprep.subr.mxu1 %v1316_v33 }
  0x1f   : > { %1109 = vmatmul.mubr.msk.f32.gmra.mxu0 %vm293_vm1, %v263_v6  ;;  %v269_v19 = vld [vmem:[%s1411_s15 + $0x48] sm:$0xff]  ;;  %v270_v20 = vld [vmem:[%s1411_s15 + $0x50] sm:$0xff]  ;;  %v287_v21 = vld [vmem:[%s1411_s15 + $0xd8] sm:$0xff]  ;;  %1156 = vmatpush3.msra.mxu1 %v747_v35 }
  0x20   : > { %1111 = vmatprep.mubr.msk.f32.mxu0 %vm293_vm1, %v264_v8  ;;  %1136 = vmatmul.mubr.msk.f32.gmra.mxu1 %vm293_vm1, %v281_v9  ;;  %v288_v22 = vld [vmem:[%s1411_s15 + $0xe0] sm:$0xff]  ;;  %v271_v23 = vld [vmem:[%s1411_s15 + $0x58] sm:$0xff]  ;;  %v289_v25 = vld [vmem:[%s1411_s15 + $0xe8] sm:$0xff] }
  0x21   : > { %1138 = vmatprep.mubr.msk.f32.mxu1 %vm293_vm1, %v282_v10  ;;  %v272_v24 = vld [vmem:[%s1411_s15 + $0x60] sm:$0xff]  ;;  %v290_v26 = vld [vmem:[%s1411_s15 + $0xf0] sm:$0xff]  ;;  %v273_v27 = vld [vmem:[%s1411_s15 + $0x68] sm:$0xff]  ;;  %1157 = vmatprep.subr.mxu1 %v1316_v33 }
  0x22   : > { %v274_v28 = vld [vmem:[%s1411_s15 + $0x70] sm:$0xff]  ;;  %v291_v29 = vld [vmem:[%s1411_s15 + $0xf8] sm:$0xff]  ;;  %v276_v31 = vld [vmem:[%s1411_s15 + $0x80] sm:$0xff]  ;;  %1158 = vmatpush3.msra.mxu1 %v746_v36 }
  0x23   : > { %1112 = vmatmul.mubr.msk.f32.gmra.mxu0 %vm293_vm1, %v265_v11  ;;  %v275_v30 = vld [vmem:[%s1411_s15 + $0x78] sm:$0xff]  ;;  %v277_v32 = vld [vmem:[%s1411_s15 + $0x88] sm:$0xff]  ;;  %1159 = vmatprep.subr.mxu1 %v1316_v33  ;;  %s1224_s15 = scalar_lea.vmem %s1584_s10, 64 }
  0x24   : > { %1114 = vmatprep.mubr.msk.f32.mxu0 %vm293_vm1, %v266_v12  ;;  %1139 = vmatmul.mubr.msk.f32.gmra.mxu1 %vm293_vm1, %v283_v13  ;;  %p1225_p11 = scmp.ne.s32.totalorder %s1584_s10, %s1224_s15  ;;  %p1232_p1 = scmp.lt.s32.totalorder %s1230_s18, %s1224_s15 }
  0x25   : > { %1141 = vmatprep.mubr.msk.f32.mxu1 %vm293_vm1, %v284_v14  ;;  %1160 = vmatpush3.msra.mxu1 %v745_v37 }
  0x26   : > { %1161 = vmatprep.subr.mxu1 %v1316_v33  ;;  %p1226_p12 = pnand %p1225_p11, %p1393_p5  ;;  %p1233_p2 = por %p1232_p1, %p1231_p0 }
  0x27   : > { %1115 = vmatmul.mubr.msk.f32.gmra.mxu0 %vm293_vm1, %v267_v15  ;;  %1162 = vmatpush3.msra.mxu1 %v744_v38 }
  0x28   : > { %1117 = vmatprep.mubr.msk.f32.mxu0 %vm293_vm1, %v268_v16  ;;  %1142 = vmatmul.mubr.msk.f32.gmra.mxu1 %vm293_vm1, %v285_v17  ;;  %p1227_p13 = pneg %p1226_p12 }
  0x29   : > { %1144 = vmatprep.mubr.msk.f32.mxu1 %vm293_vm1, %v286_v18  ;;  %1163 = vmatprep.subr.mxu1 %v1316_v33 }
  0x2a   : > { %1164 = vmatpush3.msra.mxu1 %v743_v39  ;;  %p1234_p3 = pnand %p1233_p2, %p1227_p13 }
  0x2b   : > { %1118 = vmatmul.mubr.msk.f32.gmra.mxu0 %vm293_vm1, %v269_v19  ;;  %1165 = vmatprep.subr.mxu1 %v1316_v33 }
  0x2c   : > { %1120 = vmatprep.mubr.msk.f32.mxu0 %vm293_vm1, %v270_v20  ;;  %1145 = vmatmul.mubr.msk.f32.gmra.mxu1 %vm293_vm1, %v287_v21 }
  0x2d   : > { %1147 = vmatprep.mubr.msk.f32.mxu1 %vm293_vm1, %v288_v22  ;;  %1166 = vmatpush3.msra.mxu1 %v742_v40 }
  0x2e   : > { %1167 = vmatprep.subr.mxu1 %v1316_v33 }
  0x2f   : > { %1121 = vmatmul.mubr.msk.f32.gmra.mxu0 %vm293_vm1, %v271_v23  ;;  %1168 = vmatpush3.msra.mxu1 %v741_v41 }
  0x30   : > { %1123 = vmatprep.mubr.msk.f32.mxu0 %vm293_vm1, %v272_v24  ;;  %1148 = vmatmul.mubr.msk.f32.gmra.mxu1 %vm293_vm1, %v289_v25 }
  0x31   : > { %1150 = vmatprep.mubr.msk.f32.mxu1 %vm293_vm1, %v290_v26 }
  0x33   : > { %1124 = vmatmul.mubr.msk.f32.gmra.mxu0 %vm293_vm1, %v273_v27 }
  0x34   : > { %1126 = vmatprep.mubr.msk.f32.mxu0 %vm293_vm1, %v274_v28  ;;  %1151 = vmatmul.mubr.msk.f32.gmra.mxu1 %vm293_vm1, %v291_v29 }
  0x35   : > { %1169 = vmatprep.mubr.msk.f32.mxu1 %vm1317_vm2, %v1316_v33 }
  0x37   : > { %1127 = vmatmul.mubr.msk.f32.gmra.mxu0 %vm293_vm1, %v275_v30 }
  0x38   : > { %1129 = vmatprep.mubr.msk.f32.mxu0 %vm293_vm1, %v276_v31 }
  0x3b   : > { %1130 = vmatmul.mubr.msk.f32.gmra.mxu0 %vm293_vm1, %v277_v32 }
  0xdb   : > { %v1107_v42 = vpop.f32.mrf.mxu0 }
  0xdc   : > { %v1510_v44 = vpop.f32.mrf.mxu1  ;;  %v620_v48 = vmax.f32 %v1107_v42, 0.0 }
  0xdd   : > { %v460_v43 = vpop.f32.mrf.mxu0 }
  0xde   : > { %v619_v45 = vmax.f32 %v460_v43, 0.0  ;;  %v1512_v47 = vpop.f32.mrf.mxu1  ;;  %v653_v55 = vsel %vm651_vm3, %v620_v48, 0.0 }
  0xdf   : > { %v1110_v46 = vpop.f32.mrf.mxu0 }
  0xe0   : > { %v1514_v50 = vpop.f32.mrf.mxu1  ;;  %v652_v52 = vsel %vm651_vm3, %v619_v45, 0.0  ;;  %v622_v60 = vmax.f32 %v1110_v46, 0.0 }
  0xe1   : > { %v470_v49 = vpop.f32.mrf.mxu0  ;;  %v654_v59 = vadd.f32 %v653_v55, %v652_v52 }
  0xe2   : > { %v621_v51 = vmax.f32 %v470_v49, 0.0  ;;  %v1517_v54 = vpop.f32.mrf.mxu1  ;;  %v657_v4 = vsel %vm651_vm3, %v622_v60, 0.0 }
  0xe3   : > { %v1113_v53 = vpop.f32.mrf.mxu0 }
  0xe4   : > { %v655_v56 = vsel %vm651_vm3, %v621_v51, 0.0  ;;  %v1521_v58 = vpop.f32.mrf.mxu1  ;;  %v624_v17 = vmax.f32 %v1113_v53, 0.0 }
  0xe5   : > { %v480_v57 = vpop.f32.mrf.mxu0  ;;  %v656_v63 = vadd.f32 %v655_v56, %v654_v59 }
  0xe6   : > { %v1525_v62 = vpop.f32.mrf.mxu1  ;;  %v623_v0 = vmax.f32 %v480_v57, 0.0  ;;  %v661_v34 = vsel %vm651_vm3, %v624_v17, 0.0 }
  0xe7   : > { %v1523_v61 = vpop.f32.mrf.mxu0  ;;  %v658_v7 = vadd.f32 %v657_v4, %v656_v63 }
  0xe8   : > { %v1143_v2 = vpop.f32.mrf.mxu1  ;;  %v659_v10 = vsel %vm651_vm3, %v623_v0, 0.0  ;;  %v626_v63 = vmax.f32 %v1523_v61, 0.0 }
  0xe9   : > { %v490_v1 = vpop.f32.mrf.mxu0  ;;  %v644_v3 = vmax.f32 %v1143_v2, 0.0  ;;  %v660_v21 = vadd.f32 %v659_v10, %v658_v7 }
  0xea   : > { %v580_v6 = vpop.f32.mrf.mxu1  ;;  %v625_v24 = vmax.f32 %v490_v1, 0.0 }
  0xeb   : > { %v1119_v5 = vpop.f32.mrf.mxu0  ;;  %v716_v8 = vsel %vm651_vm3, %v644_v3, 0.0  ;;  %v643_v9 = vmax.f32 %v580_v6, 0.0  ;;  %v662_v39 = vadd.f32 %v661_v34, %v660_v21 }
  0xec   : > { %v628_v11 = vmax.f32 %v1119_v5, 0.0  ;;  %v1146_v13 = vpop.f32.mrf.mxu1  ;;  %v663_v42 = vsel %vm651_vm3, %v625_v24, 0.0  ;;  %v638_v24 = vmax.f32 %v1510_v44, 0.0 }
  0xed   : > { %v500_v12 = vpop.f32.mrf.mxu0  ;;  %v715_v15 = vsel %vm651_vm3, %v643_v9, 0.0  ;;  %v646_v16 = vmax.f32 %v1146_v13, 0.0  ;;  %v664_v2 = vadd.f32 %v663_v42, %v662_v39 }
  0xee   : > { %v627_v14 = vmax.f32 %v500_v12, 0.0  ;;  %v717_v19 = vadd.f32 %v716_v8, %v715_v15  ;;  %v590_v20 = vpop.f32.mrf.mxu1  ;;  %v674_v25 = vsel %vm651_vm3, %v628_v11, 0.0  ;;  %v665_v15 = vsel %vm651_vm3, %v626_v63, 0.0 }
  0xef   : > { %v1122_v18 = vpop.f32.mrf.mxu0  ;;  %v645_v23 = vmax.f32 %v590_v20, 0.0  ;;  %v720_v30 = vsel %vm651_vm3, %v646_v16, 0.0  ;;  %v666_v20 = vadd.f32 %v665_v15, %v664_v2  ;;  %v699_v34 = vsel %vm651_vm3, %v638_v24, 0.0 }
  0xf0   : > { %v673_v22 = vsel %vm651_vm3, %v627_v14, 0.0  ;;  %v630_v26 = vmax.f32 %v1122_v18, 0.0  ;;  %v1149_v28 = vpop.f32.mrf.mxu1 }
  0xf1   : > { %v510_v27 = vpop.f32.mrf.mxu0  ;;  %v718_v31 = vsel %vm651_vm3, %v645_v23, 0.0  ;;  %v648_v32 = vmax.f32 %v1149_v28, 0.0  ;;  %v675_v35 = vadd.f32 %v674_v25, %v673_v22 }
  0xf2   : > { %v629_v29 = vmax.f32 %v510_v27, 0.0  ;;  %v719_v37 = vadd.f32 %v718_v31, %v717_v19  ;;  %v600_v38 = vpop.f32.mrf.mxu1  ;;  %v678_v43 = vsel %vm651_vm3, %v630_v26, 0.0  ;;  %v637_v19 = vmax.f32 %v1512_v47, 0.0 }
  0xf3   : > { %v1125_v36 = vpop.f32.mrf.mxu0  ;;  %v647_v41 = vmax.f32 %v600_v38, 0.0  ;;  %v724_v53 = vsel %vm651_vm3, %v648_v32, 0.0  ;;  %v667_v31 = vrot.slane %v666_v20, 4  ;;  %v639_v32 = vmax.f32 %v1517_v54, 0.0 }
  0xf4   : > { %v676_v40 = vsel %vm651_vm3, %v629_v29, 0.0  ;;  %v721_v48 = vadd.f32 %v720_v30, %v719_v37  ;;  %v1152_v49 = vpop.f32.mrf.mxu1  ;;  %v632_v51 = vmax.f32 %v1125_v36, 0.0  ;;  %v697_v30 = vsel %vm651_vm3, %v637_v19, 0.0 }
  0xf5   : > { %v677_v45 = vadd.f32 %v676_v40, %v675_v35  ;;  %v520_v46 = vpop.f32.mrf.mxu0  ;;  %v722_v55 = vsel %vm651_vm3, %v647_v41, 0.0  ;;  %v650_v5 = vmax.f32 %v1152_v49, 0.0  ;;  %v640_v35 = vmax.f32 %v1514_v50, 0.0 }
  0xf6   : > { %v631_v52 = vmax.f32 %v520_v46, 0.0  ;;  %v723_v59 = vadd.f32 %v722_v55, %v721_v48  ;;  %v610_v60 = vpop.f32.mrf.mxu1  ;;  %v682_v7 = vsel %vm651_vm3, %v632_v51, 0.0  ;;  %v668_v38 = vadd.f32 %v667_v31, %v666_v20 }
  0xf7   : > { %v679_v56 = vadd.f32 %v678_v43, %v677_v45  ;;  %v1128_v57 = vpop.f32.mrf.mxu0  ;;  %v649_v1 = vmax.f32 %v610_v60, 0.0  ;;  %v728_v17 = vsel %vm651_vm3, %v650_v5, 0.0  ;;  %v701_v39 = vsel %vm651_vm3, %v639_v32, 0.0 }
  0xf8   : > { %v680_v0 = vsel %vm651_vm3, %v631_v52, 0.0  ;;  %v725_v6 = vadd.f32 %v724_v53, %v723_v59  ;;  %v634_v8 = vmax.f32 %v1128_v57, 0.0  ;;  %v641_v40 = vmax.f32 %v1525_v62, 0.0 }
  0xf9   : > { %v681_v3 = vadd.f32 %v680_v0, %v679_v56  ;;  %v530_v4 = vpop.f32.mrf.mxu0  ;;  %v726_v10 = vsel %vm651_vm3, %v649_v1, 0.0  ;;  %v703_v42 = vsel %vm651_vm3, %v640_v35, 0.0  ;;  %v642_v43 = vmax.f32 %v1521_v58, 0.0 }
  0xfa   : > { %v633_v9 = vmax.f32 %v530_v4, 0.0  ;;  %v727_v61 = vadd.f32 %v726_v10, %v725_v6  ;;  %v686_v21 = vsel %vm651_vm3, %v634_v8, 0.0  ;;  %v669_v48 = vrot.slane %v668_v38, 2 }
  0xfb   : > { %v683_v11 = vadd.f32 %v682_v7, %v681_v3  ;;  %v1131_v12 = vpop.f32.mrf.mxu0  ;;  %v705_v49 = vsel %vm651_vm3, %v641_v40, 0.0  ;;  %v707_v51 = vsel %vm651_vm3, %v642_v43, 0.0  ;;  %v831_v19 = vlaneseq }
  0xfc   : > { %v684_v13 = vsel %vm651_vm3, %v633_v9, 0.0  ;;  %v636_v14 = vmax.f32 %v1131_v12, 0.0  ;;  %v729_v27 = vadd.f32 %v728_v17, %v727_v61  ;;  %v670_v56 = vadd.f32 %v669_v48, %v668_v38  ;;  %v1053_v61 = vld [vmem:[%s1648_s4] ss:$0 sm:$0xff] }
  0xfd   : > { %v685_v16 = vadd.f32 %v684_v13, %v683_v11  ;;  %v540_v18 = vpop.f32.mrf.mxu0  ;;  %v832_v20 = vand.u32 127, %v831_v19 }
  0xfe   : > { %v635_v22 = vmax.f32 %v540_v18, 0.0  ;;  %v695_v25 = vsel %vm651_vm3, %v636_v14, 0.0  ;;  %v730_v37 = vrot.slane %v729_v27, 4  ;;  %v671_v63 = vrot.slane %v670_v56, 1 }
  0xff   : > { %v687_v23 = vadd.f32 %v686_v21, %v685_v16  ;;  %vm833_vm8 = vcmp.lt.s32.totalorder %v832_v20, 8  ;;  %vm885_vm9 = vcmp.eq.s32.totalorder %v832_v20, 8 }
 0x100   : > { %v694_v26 = vsel %vm651_vm3, %v635_v22, 0.0  ;;  %v731_v54 = vadd.f32 %v730_v37, %v729_v27  ;;  %v672_v3 = vadd.f32 %v671_v63, %v670_v56  ;;  %v1051_v21 = vsel %vm833_vm8, 1.0, %v1316_v33 }
 0x101   : > { %v688_v28 = vrot.slane %v687_v23, 4  ;;  %v696_v29 = vadd.f32 %v695_v25, %v694_v26  ;;  %v1054_v24 = vsel %vm885_vm9, 1.0, %v1316_v33 }
 0x102   : > { %v732_v53 = vrot.slane %v731_v54, 2  ;;  %v737_v8 = vmul.f32 0.015625, %v672_v3 }
 0x103   : > { %v698_v47 = vadd.f32 %v697_v30, %v696_v29  ;;  %v689_v36 = vadd.f32 %v688_v28, %v687_v23  ;;  %v1052_v23 = vld [vmem:[%s1647_s3] ss:$0 sm:$0xff] }
 0x104   : > { %v733_v59 = vadd.f32 %v732_v53, %v731_v54 }
 0x105   : > { %v700_v44 = vadd.f32 %v699_v34, %v698_v47  ;;  %v690_v45 = vrot.slane %v689_v36, 2 }
 0x106   : > { %v734_v1 = vrot.slane %v733_v59, 1 }
 0x107   : > { %v702_v41 = vadd.f32 %v701_v39, %v700_v44  ;;  %v691_v52 = vadd.f32 %v690_v45, %v689_v36 }
 0x108   : > { %v735_v6 = vadd.f32 %v734_v1, %v733_v59 }
 0x109   : > { %v704_v46 = vadd.f32 %v703_v42, %v702_v41  ;;  %v692_v62 = vrot.slane %v691_v52, 1 }
 0x10a   : > { %v740_v10 = vmul.f32 0.015625, %v735_v6 }
 0x10b   : > { %v706_v50 = vadd.f32 %v705_v49, %v704_v46  ;;  %v693_v58 = vadd.f32 %v692_v62, %v691_v52 }
 0x10d   : > { %v708_v55 = vadd.f32 %v707_v51, %v706_v50  ;;  %v738_v5 = vmul.f32 0.015625, %v693_v58 }
 0x10f   : > { %v709_v57 = vrot.slane %v708_v55, 4  ;;  %v754_v11 = vsel %vm753_vm4, %v738_v5, %v737_v8 }
 0x111   : > { %v710_v60 = vadd.f32 %v709_v57, %v708_v55 }
 0x113   : > { %v711_v0 = vrot.slane %v710_v60, 2 }
 0x115   : > { %v712_v2 = vadd.f32 %v711_v0, %v710_v60 }
 0x117   : > { %v713_v4 = vrot.slane %v712_v2, 1 }
 0x119   : > { %v714_v7 = vadd.f32 %v713_v4, %v712_v2 }
 0x11b   : > { %v739_v9 = vmul.f32 0.015625, %v714_v7 }
 0x11d   : > { %v756_v12 = vsel %vm755_vm5, %v739_v9, %v754_v11 }
 0x11e   : > { %v758_v13 = vsel %vm757_vm6, %v740_v10, %v756_v12 }
 0x11f   : > { %1170 = vmatmul.mubr.msk.f32.vlgmr.msra.gmra.mxu1 %vm651_vm3, %v758_v13 }
 0x1df   : > { %v827_v14 = vpop.f32.mrf.mxu1 }
 0x1e0   : > { %v845_v15 = vmax.f32 %v827_v14, 0.0  ;;  %v836_v22 = vmul.f32 %v1051_v21, %v827_v14 }
 0x1e1   : > { %v1171_v16 = vpop.f32.mrf.mxu1 }
 0x1e2   : > { %v853_v17 = vmul.f32 %v1053_v61, %v845_v15  ;;  %v844_v26 = vadd.f32 %v1052_v23, %v836_v22 }
 0x1e4   : > { %v855_v18 = vsel %vm854_vm7, %v853_v17, 0.0 }
 0x1e5   : > { %856 = vadd.xlane.f32.xlu0 %v855_v18 }
 0x26e   : > { %v857_v25 = vpop.xlane.xlu0 %856 }
 0x26f   : > { %v858_v27 = vsel %vm854_vm7, %v857_v25, -inf  ;;  %v888_v28 = vmul.f32 %v1054_v24, %v857_v25 }
 0x270   : > { %v859_v29 = vrot.slane %v858_v27, 4 }
 0x271   : > { %v889_v30 = vadd.f32 %v888_v28, %v844_v26 }
 0x272   : > { %v860_v33 = vmax.f32 %v858_v27, %v859_v29 }
 0x273   : > { %890 = vst [vmem:[%s248_s9] sm:$0xf] %v889_v30 }
 0x274   : > { %v861_v31 = vrot.slane %v860_v33, 2 }
 0x275   : > { %1237 = shalt.err (!%p1234_p3)
}
 0x276   : > { %s1238_s20 = scalar_lea.hbm %s1582_s13, 64  ;;  %s1242_s29 = scalar_lea.hbm %s1649_s5, 128 }
 0x277   : > { %p1239_p4 = scmp.ne.s32.totalorder %s1582_s13, %s1238_s20  ;;  %p1243_p9 = scmp.lt.s32.totalorder %s1582_s13, %s1649_s5 }
 0x278   : > { %p1244_p10 = scmp.lt.s32.totalorder %s1242_s29, %s1238_s20 }
 0x279   : > { %p1240_p7 = pnand %p1239_p4, %p1393_p5 }
 0x27a   : > { %p1245_p11 = por %p1244_p10, %p1243_p9 }
 0x27b   : > { %p1241_p8 = pneg %p1240_p7 }
 0x27d   : > { %p1246_p12 = pnand %p1245_p11, %p1241_p8 }
 0x27f   : > { %1249 = shalt.err (!%p1246_p12)
}
 0x280   : > { %1174 = dma.vmem_to_hbm [thread:$0]  (%p1393_p5), %s1584_s10, 64, %s1582_s13, %s893_s14   ;;  %v862_v32 = vmax.f32 %v860_v33, %v861_v31 }
 0x281   : > { %s1057_s10 = sshll.u32 %s1376_s25, 4  ;;  %s254_s12 = scalar_lea.vmem [#allocation4], %s1569_s19 }
 0x282   : > { %v863_v47 = vrot.slane %v862_v32, 1  ;;  %s923_s13 = sshll.u32 %s254_s12, 4  ;;  %s921_s16 = scalar_lea.hbm %s1650_s6, %s1057_s10  ;;  %s924_s13 = int_to_ptr.vmem [resolvable:$true] %s923_s13 }
 0x283   : > { %s898_s17 = scalar_lea.sflag [#allocation5], %s1569_s19  ;;  %s1250_s18 = scalar_lea.vmem %s924_s13, 16 }
 0x284   : > { %v864_v34 = vmax.f32 %v862_v32, %v863_v47  ;;  %p1251_p13 = scmp.ne.s32.totalorder %s924_s13, %s1250_s18  ;;  %s1319_s20 = smov [#allocation4]  }
 0x285   : > { %s1254_s26 = sshll.u32 %s1319_s20, 4  ;;  %s1255_s26 = int_to_ptr.vmem [resolvable:$false] %s1254_s26 }
 0x286   : > { %v865_v35 = vsub.f32 %v857_v25, %v864_v34  ;;  %p1252_p0 = pnand %p1251_p13, %p1393_p5  ;;  %s1256_s25 = scalar_lea.vmem %s1255_s26, 32 }
 0x287   : > { %p1257_p2 = scmp.lt.s32.totalorder %s924_s13, %s1255_s26  ;;  %p1258_p3 = scmp.lt.s32.totalorder %s1256_s25, %s1250_s18 }
 0x288   : > { %v866_v36 = vmul.f32 1.442695, %v865_v35  ;;  %p1253_p1 = pneg %p1252_p0 }
 0x289   : > { %p1259_p4 = por %p1258_p3, %p1257_p2 }
 0x28a   : > { %1220 = vpow2.f32 %v866_v36 }
 0x28b   : > { %p1260_p7 = pnand %p1259_p4, %p1253_p1 }
 0x297   : > { %v1221_v37 = vpop.eup %1220 }
 0x298   : > { %v868_v44 = vsel %vm854_vm7, %v1221_v37, 0.0 }
 0x299   : > { %v869_v38 = vrot.slane %v868_v44, 4 }
 0x29b   : > { %v870_v39 = vadd.f32 %v869_v38, %v868_v44 }
 0x29d   : > { %v871_v40 = vrot.slane %v870_v39, 2 }
 0x29f   : > { %v872_v41 = vadd.f32 %v871_v40, %v870_v39 }
 0x2a1   : > { %v873_v42 = vrot.slane %v872_v41, 1 }
 0x2a3   : > { %v874_v43 = vadd.f32 %v873_v42, %v872_v41 }
 0x2a5   : > { %1222 = vrcp.f32 %v874_v43 }
 0x2b2   : > { %v1223_v45 = vpop.eup %1222 }
 0x2b3   : > { %v876_v54 = vmul.f32 %v1223_v45, %v1221_v37 }
 0x2b5   : > { %v877_v46 = vmul.f32 %v876_v54, %v844_v26 }
 0x2b7   : > { %v878_v48 = vsel %vm854_vm7, %v877_v46, 0.0 }
 0x2b8   : > { %v879_v49 = vrot.slane %v878_v48, 4 }
 0x2ba   : > { %v880_v50 = vadd.f32 %v879_v49, %v878_v48 }
 0x2bc   : > { %v881_v51 = vrot.slane %v880_v50, 2 }
 0x2be   : > { %v882_v52 = vadd.f32 %v881_v51, %v880_v50 }
 0x2c0   : > { %v883_v53 = vrot.slane %v882_v52, 1 }
 0x2c2   : > { %v884_v55 = vadd.f32 %v883_v53, %v882_v52 }
 0x2c4   : > { %891 = vst [vmem:[%s254_s12] sm:$0x1] %v884_v55 }
 0x2c5   : > { %1263 = shalt.err (!%p1260_p7)
}
 0x2c6   : > { %s1264_s28 = scalar_lea.hbm %s921_s16, 16  ;;  %s1268_s9 = scalar_lea.hbm %s1650_s6, 32 }
 0x2c7   : > { %p1265_p8 = scmp.ne.s32.totalorder %s921_s16, %s1264_s28  ;;  %p1269_p11 = scmp.lt.s32.totalorder %s921_s16, %s1650_s6 }
 0x2c8   : > { %p1270_p12 = scmp.lt.s32.totalorder %s1268_s9, %s1264_s28 }
 0x2c9   : > { %p1266_p9 = pnand %p1265_p8, %p1393_p5 }
 0x2ca   : > { %p1271_p13 = por %p1270_p12, %p1269_p11 }
 0x2cb   : > { %p1267_p10 = pneg %p1266_p9 }
 0x2cd   : > { %p1272_p0 = pnand %p1271_p13, %p1267_p10 }
 0x2cf   : > { %1275 = shalt.err (!%p1272_p0)
}
 0x2d0   : > { %1175 = dma.vmem_to_hbm [thread:$0]  (%p1393_p5), %s924_s13, 16, %s921_s16, %s898_s17  }
 0x2d1 PF: > { %p1185_p1 = scmp.ge.s32.totalorder %s1314_s24, 2  ;;  %s935_s12 = sand.u32 1, %s1302_s21  }
 0x2d2   : > { %s936_s14 = scalar_lea.sflag [#allocation3], %s935_s12 }
 0x2d3   : > { %p1179_p2 = pnand %p1185_p1, %p1397_p6 }
 0x2d5   : > { %p1180_p3 = pneg %p1179_p2 }
 0x2d7   : > { %1293 = dma.done.wait (%p1180_p3), %s936_s14, 64  }
 0x2d8   : > { %1295 = vsyncadd (%p1180_p3), %s936_s14, 4294967232  ;;  %s945_s15 = scalar_lea.sflag [#allocation5], %s935_s12 }
 0x2d9   : > { %1297 = dma.done.wait (%p1180_p3), %s945_s15, 16  }
 0x2da   : > { %1299 = vsyncadd (%p1180_p3), %s945_s15, 4294967280  ;;  %p20_p5 = scmp.ge.s32.totalorder %s1380_s27, 4   ;;  %s1653_s21 = smov %s1306_s22 }
 0x2db   : > { %s1654_s22 = smov %s1310_s23  ;;  %s1655_s23 = smov %s1391_s30 }
 0x2dc   : > { %s1656_s24 = smov %s1380_s27  ;;  %22 = sbr.rel (!%p20_p5) target bundleno = 5 (0x5), region = 92 }
 0x2e1   :  { %949 = vsyncpa [#allocation3], 1 }
 0x2e2   :  { %951 = vsyncpa [#allocation3 + $0x1], 1 }
 0x2e3   :  { %952 = vsyncpa [#allocation5], 1 }
 0x2e4   :  { %954 = vsyncpa [#allocation5 + $0x1], 1 }

</bundles_post_ra>
